<compile_context>
chip_gen: v6e
topology: v6e:2x2x1
jax: 0.10.0
libtpu: 0.0.40
codegen_flags: <defaults>
</compile_context>

<pallas_src>
import math

import jax
import jax.numpy as jnp
from jax.experimental import pallas as pl
from jax.experimental.pallas import tpu as pltpu

_LANES = 128
_MiB = 1024 * 1024


# ----------------------------- kernels -------------------------------------


def _drop_path_kernel(scale_ref, x_ref, o_ref):
    # scale_ref: VMEM (bb, 1, 1) in x.dtype (per-sample mask / keep_prob)
    # x_ref / o_ref: VMEM (bb, rows_blk, 128)
    o_ref[...] = x_ref[...] * scale_ref[...]


def _drop_path_add_kernel(scale_ref, x_ref, r_ref, o_ref):
    # Fused residual add: o = residual + scale * x  (same block layout as above)
    o_ref[...] = r_ref[...] + x_ref[...] * scale_ref[...]


# --------------------------- tiling planning --------------------------------


def _tpu_target_block_bytes():
    """Per-generation DMA block-size target (2 MiB on v4/v5, 4 MiB on v6e/v7x)."""
    try:
        kind = jax.devices()[0].device_kind.lower()
    except Exception:
        kind = ""
    if "v4" in kind or "v5" in kind:
        return 2 * _MiB
    return 4 * _MiB


def _plan_tiles(B, R, itemsize, target_block_bytes):
    """Pick (bb, rows_blk) for x blocks of shape (bb, rows_blk, 128)."""
    sublane = max(8, 32 // itemsize)         # 8 f32 / 16 bf16 / 32 int8
    row_bytes = _LANES * itemsize
    slab_bytes = R * row_bytes               # one sample's slab

    if slab_bytes >= target_block_bytes:
        # Part of one sample per block.
        bb = 1
        rows_blk = max(1, target_block_bytes // row_bytes)
        rows_blk = min(rows_blk, R)
        if R > sublane:
            rows_blk = max(sublane, (rows_blk // sublane) * sublane)
        # else rows_blk == R (full-dim block, allowed).
    else:
        # Pack several full samples per block (amortize per-step overhead).
        rows_blk = R
        bb = max(1, min(B, target_block_bytes // max(1, slab_bytes)))

    # v7x has 2 TensorCores sharing HBM: make sure the parallel grid has >= 2
    # steps so both cores contribute bandwidth.
    if pl.cdiv(B, bb) * pl.cdiv(R, rows_blk) < 2:
        if B >= 2:
            bb = (B + 1) // 2
        elif R > sublane:
            half = pl.cdiv(R, 2)
            rows_blk = min(R, max(sublane, pl.cdiv(half, sublane) * sublane))
    return bb, rows_blk


# ------------------------------ launcher ------------------------------------


def _scale_pallas(x, scale, residual=None, *, donate_x=False,
                  target_block_bytes=None):
    """o = (residual +) scale[b] * x with a per-sample scalar `scale` (B,)."""
    if target_block_bytes is None:
        target_block_bytes = _tpu_target_block_bytes()

    B = x.shape[0]
    N = math.prod(x.shape[1:])
    itemsize = jnp.dtype(x.dtype).itemsize
    scale = scale.astype(x.dtype)
    scale3 = scale.reshape(B, 1, 1)

    x2 = x.reshape(B, N)
    r2 = residual.reshape(B, N) if residual is not None else None
    n_aligned = (N // _LANES) * _LANES

    parts = []
    if n_aligned > 0:
        R = n_aligned // _LANES
        bb, rows_blk = _plan_tiles(B, R, itemsize, target_block_bytes)
        grid = (pl.cdiv(B, bb), pl.cdiv(R, rows_blk))

        x_spec = pl.BlockSpec((bb, rows_blk, _LANES), lambda b, r: (b, r, 0))
        s_spec = pl.BlockSpec((bb, 1, 1), lambda b, r: (b, 0, 0))

        # Explicit VMEM budget: double-buffered in(+residual)+out blocks + headroom.
        block_bytes = bb * rows_blk * _LANES * itemsize
        n_streams = 3 if residual is not None else 2
        vmem_limit = int(block_bytes * 2 * n_streams + 2 * _MiB)
        vmem_limit = max(16 * _MiB, min(vmem_limit, 48 * _MiB))

        x_al = x2 if n_aligned == N else x2[:, :n_aligned]
        operands = [scale3, x_al.reshape(B, R, _LANES)]
        in_specs = [s_spec, x_spec]
        kern = _drop_path_kernel
        if residual is not None:
            r_al = r2 if n_aligned == N else r2[:, :n_aligned]
            operands.append(r_al.reshape(B, R, _LANES))
            in_specs.append(x_spec)
            kern = _drop_path_add_kernel

        # NOTE: a further optimization (skipping the input DMA for dropped
        # samples via scalar-prefetched masks) is possible but not done here.
        out3 = pl.pallas_call(
            kern,
            out_shape=jax.ShapeDtypeStruct((B, R, _LANES), x.dtype),
            grid=grid,
            in_specs=in_specs,
            out_specs=x_spec,
            input_output_aliases={1: 0} if donate_x else {},
            compiler_params=pltpu.CompilerParams(
                dimension_semantics=("parallel", "parallel"),
                vmem_limit_bytes=vmem_limit),
        )(*operands)
        parts.append(out3.reshape(B, n_aligned))

    if n_aligned < N:
        # Tiny (<128 elems/sample) unaligned tail: plain jnp beats a
        # sublane-wasteful (B, tail) Pallas block.
        tail = x2[:, n_aligned:] * scale.reshape(B, 1)
        if residual is not None:
            tail = r2[:, n_aligned:] + tail
        parts.append(tail)

    out2 = parts[0] if len(parts) == 1 else jnp.concatenate(parts, axis=1)
    return out2.reshape(x.shape)


def _per_sample_scale(x, drop_prob, key):
    """Per-sample mask/keep_prob, with the uniform drawn in x.dtype (timm-style)."""
    keep_prob = 1.0 - drop_prob
    u = jax.random.uniform(key, (x.shape[0],), dtype=x.dtype)
    mask = jnp.floor(jnp.asarray(keep_prob, x.dtype) + u)      # {0, 1}
    return (mask.astype(jnp.float32) / jnp.float32(keep_prob)).astype(x.dtype)


def drop_path_pallas(x, drop_prob: float = 0.0, training: bool = False,
                     key=None, *, donate_x: bool = False,
                     target_block_bytes=None):
    """Pallas implementation of drop_path (stochastic depth) forward."""
    if drop_prob == 0.0 or not training:
        return x
    assert key is not None, "need a PRNG key when training with drop_prob > 0"
    scale = _per_sample_scale(x, drop_prob, key)
    return _scale_pallas(x, scale, donate_x=donate_x,
                         target_block_bytes=target_block_bytes)


def drop_path_add_pallas(residual, x, drop_prob: float = 0.0,
                         training: bool = False, key=None, *,
                         donate_x: bool = False, target_block_bytes=None):
    """Fused `residual + drop_path(x)` — saves one full HBM read+write pass."""
    if drop_prob == 0.0 or not training:
        return residual + x
    assert key is not None, "need a PRNG key when training with drop_prob > 0"
    assert residual.shape == x.shape and residual.dtype == x.dtype
    scale = _per_sample_scale(x, drop_prob, key)
    return _scale_pallas(x, scale, residual=residual, donate_x=donate_x,
                         target_block_bytes=target_block_bytes)


# ------------------------------ reference -----------------------------------


def _drop_path_ref(x, drop_prob, training, key):
    """Pure-JAX reference mirroring the torch implementation."""
    if drop_prob == 0.0 or not training:
        return x
    keep_prob = 1.0 - drop_prob
    u = jax.random.uniform(key, (x.shape[0],), dtype=x.dtype)
    mask = jnp.floor(keep_prob + u).reshape((x.shape[0],) + (1,) * (x.ndim - 1))
    return x / keep_prob * mask


if __name__ == "__main__":
    key = jax.random.PRNGKey(0)
    k_x, k_r, k_mask = jax.random.split(key, 3)

    # Small NCHW input consistent with typical DropPath usage.
    B, C, H, W = 2, 4, 16, 16
    x = jax.random.normal(k_x, (B, C, H, W), dtype=jnp.float32)
    res = jax.random.normal(k_r, (B, C, H, W), dtype=jnp.float32)
    drop_prob = 0.25

    y_ref = _drop_path_ref(x, drop_prob, True, k_mask)

    # Training path (stochastic): kernel vs reference with the same PRNG key.
    y = jax.block_until_ready(
        drop_path_pallas(x, drop_prob=drop_prob, training=True, key=k_mask))
    assert jnp.allclose(y, y_ref, atol=1e-5, rtol=1e-5)

    # Fused residual-add path.
    y_fused = jax.block_until_ready(
        drop_path_add_pallas(res, x, drop_prob=drop_prob, training=True,
                             key=k_mask))
    assert jnp.allclose(y_fused, res + y_ref, atol=1e-5, rtol=1e-5)

    # Eval path: identity.
    y_eval = jax.block_until_ready(
        drop_path_pallas(x, drop_prob=drop_prob, training=False, key=k_mask))
    assert jnp.allclose(y_eval, x)

    # Per-sample size not divisible by 128 (aligned-prefix kernel + jnp tail).
    x_t = jax.random.normal(k_x, (2, 3, 9, 25), dtype=jnp.float32)  # N = 675
    y_t = jax.block_until_ready(
        drop_path_pallas(x_t, drop_prob=drop_prob, training=True, key=k_mask))
    y_t_ref = _drop_path_ref(x_t, drop_prob, True, k_mask)
    assert jnp.allclose(y_t, y_t_ref, atol=1e-5, rtol=1e-5)

    print("KERNEL_OK")
</pallas_src>

<mosaic_0001>
module attributes {stable_mosaic.version = 11 : i64} {
  func.func @_drop_path_kernel(%arg0: i32, %arg1: i32, %arg2: memref<1x1x1xf32, #tpu.memory_space<vmem>>, %arg3: memref<1x8x128xf32, #tpu.memory_space<vmem>>, %arg4: memref<1x8x128xf32, #tpu.memory_space<vmem>>) attributes {dimension_semantics = [#tpu.dimension_semantics<parallel>, #tpu.dimension_semantics<parallel>], iteration_bounds = array<i64: 2, 1>, scalar_prefetch = 0 : i64, scratch_operands = 0 : i64, tpu.core_type = #tpu.core_type<tc>, window_params = [{transform_indices = @transform_0, window_bounds = array<i64: 1, 1, 1>}, {transform_indices = @transform_1, window_bounds = array<i64: 1, 8, 128>}, {transform_indices = @transform_2, window_bounds = array<i64: 1, 8, 128>}]} {
    %c0 = arith.constant 0 : index
    %c0_0 = arith.constant 0 : index
    %c0_1 = arith.constant 0 : index
    %0 = vector.load %arg3[%c0, %c0_0, %c0_1] : memref<1x8x128xf32, #tpu.memory_space<vmem>>, vector<1x8x128xf32>
    %c0_2 = arith.constant 0 : index
    %c0_3 = arith.constant 0 : index
    %c0_4 = arith.constant 0 : index
    %1 = vector.load %arg2[%c0_2, %c0_3, %c0_4] : memref<1x1x1xf32, #tpu.memory_space<vmem>>, vector<1x1x1xf32>
    %2 = vector.broadcast %1 : vector<1x1x1xf32> to vector<1x8x128xf32>
    %3 = arith.mulf %0, %2 : vector<1x8x128xf32>
    %c0_5 = arith.constant 0 : index
    %c0_6 = arith.constant 0 : index
    %c0_7 = arith.constant 0 : index
    %4 = vector.load %arg4[%c0_5, %c0_6, %c0_7] : memref<1x8x128xf32, #tpu.memory_space<vmem>>, vector<1x8x128xf32>
    tpu.vector_store %arg4[%c0_5, %c0_6, %c0_7], %3 {strides = array<i32>} : memref<1x8x128xf32, #tpu.memory_space<vmem>>, vector<1x8x128xf32>,
    return
  }
  func.func @transform_0(%arg0: i32, %arg1: i32) -> (i32, i32, i32) {
    %c0_i32 = arith.constant 0 : i32
    %c0_i32_0 = arith.constant 0 : i32
    %c0_i32_1 = arith.constant 0 : i32
    return %arg0, %c0_i32, %c0_i32_0 : i32, i32, i32
  }
  func.func @transform_1(%arg0: i32, %arg1: i32) -> (i32, i32, i32) {
    %c0_i32 = arith.constant 0 : i32
    %c0_i32_0 = arith.constant 0 : i32
    return %arg0, %arg1, %c0_i32 : i32, i32, i32
  }
  func.func @transform_2(%arg0: i32, %arg1: i32) -> (i32, i32, i32) {
    %c0_i32 = arith.constant 0 : i32
    %c0_i32_0 = arith.constant 0 : i32
    return %arg0, %arg1, %c0_i32 : i32, i32, i32
  }
}

</mosaic_0001>

<bundles_post_ra>
// kernel: tpu_custom_call.1
= control target key start
LH: loop header
LB: loop body
LE: loop exit
PB: predicated region body
PF: predicated region fallthrough
CT: control target
= control target key end

     0   :  { %7 = vsyncpa [#allocation3], 0  ;;  %s652_s0 = inlined_call_operand.vmem [shape: f32[2,1,1], index: 0, kind: input, shape index: {}]   ;;  %s653_s1 = inlined_call_operand.hbm [shape: f32[2,8,128], index: 1, kind: input, shape index: {}]   ;;  %s654_s2 = inlined_call_operand.hbm [shape: f32[2,8,128], index: 2, kind: output, shape index: {}]  }
   0x1   :  { %9 = vsyncpa [#allocation3 + $0x1], 0 }
   0x2   :  { %10 = vsyncpa [#allocation4], 0 }
   0x3   :  { %12 = vsyncpa [#allocation4 + $0x1], 0  ;;  %s513_s9 = smov 0   ;;  %s515_s10 = smov 0  }
   0x4   :  { %s517_s11 = smov 0   ;;  %s519_s12 = smov 0  }
   0x5   :  { %s521_s13 = smov 0   ;;  %s523_s14 = smov 0  }
   0x6 LB: > { %s307_s15 = sadd.s32 4294967295, %s493_s14   ;;  %s308_s16 = sadd.s32 4294967294, %s493_s14   ;;  %s493_s14 = sphi %s523_s14, %s18_s14   ;;  %s489_s13 = sphi %s521_s13, %s666_s13   ;;  %s485_s12 = sphi %s519_s12, %s665_s12   ;;  %s481_s11 = sphi %s517_s11, %s664_s11   ;;  %s477_s10 = sphi %s515_s10, %s663_s10   ;;  %s473_s9 = sphi %s513_s9, %s662_s9  }
   0x7   : > { %s30_s17 = sadd.s32 1, %s489_s13  ;;  %s65_s18 = sadd.s32 1, %s481_s11 }
   0x8   : > { %p32_p0 = scmp.ge.s32.totalorder %s30_s17, 2  ;;  %p72_p1 = scmp.ne.s32.totalorder %s481_s11, %s477_s10 }
   0x9   : > { %p73_p2 = scmp.eq.s32.totalorder %s493_s14, 0  ;;  %p78_p3 = scmp.ne.s32.totalorder %s477_s10, %s473_s9 }
   0xa   : > { %s668_s17 = smov (%p32_p0, %s30_s17), 0  ;;  %p79_p5 = scmp.eq.s32.totalorder %s307_s15, 0 }
   0xb   : > { %p554_p4 = por %p73_p2, %p72_p1  ;;  %s60_s20 = ssub.s32 %s489_s13, %s668_s17 }
   0xc   : > { %p104_p6 = scmp.eq.s32.totalorder %s307_s15, 1  ;;  %p63_p7 = scmp.eq.s32.totalorder %s60_s20, 0 }
   0xd   : > { %p560_p8 = por %p79_p5, %p78_p3  ;;  %p110_p10 = scmp.eq.s32.totalorder %s308_s16, 1 }
   0xe   : > { %p564_p9 = por %p104_p6, %p72_p1  ;;  %p333_p13 = scmp.lt.s32.totalorder %s493_s14, 2 }
   0xf   : > { %s569_s23 = scalar_select %p63_p7, %s481_s11, %s65_s18  }
  0x10   : > { %p571_p11 = por %p110_p10, %p78_p3  ;;  %s136_s25 = sand.u32 1, %s481_s11  }
  0x11   : > { %s311_s26 = sshll.u32 %s136_s25, 3  ;;  %s312_s27 = sshll.u32 %s489_s13, 7 }
  0x12   : > { %s658_s24 = scalar_select %p571_p11, 1, 0 }
  0x13   : > { %s146_s30 = scalar_lea.hbm %s653_s1, %s312_s27  ;;  %s140_s3 = scalar_lea.vmem [#allocation2], %s311_s26 }
  0x14   : > { %s148_s4 = sshll.u32 %s140_s3, 4  ;;  %p584_p0 = pnand %p333_p13, %p554_p4  ;;  %s149_s4 = int_to_ptr.vmem [resolvable:$true] %s148_s4 }
  0x15   : > { %p313_p1 = scmp.ge.s32.totalorder %s493_s14, 1  ;;  %p153_p2 = scmp.lt.s32.totalorder %s493_s14, 3 }
  0x16   : > { %s137_s6 = scalar_lea.sflag [#allocation3], %s136_s25  ;;  %p387_p3 = pneg %p584_p0 }
  0x17   : > { %s398_s7 = scalar_lea.vmem %s149_s4, 128  ;;  %s495_s8 = smov [#allocation2]  }
  0x18   : > { %p399_p5 = scmp.ne.s32.totalorder %s149_s4, %s398_s7  ;;  %s403_s15 = sshll.u32 %s495_s8, 4  ;;  %s404_s15 = int_to_ptr.vmem [resolvable:$false] %s403_s15 }
  0x19   : > { %s405_s16 = scalar_lea.vmem %s404_s15, 256  ;;  %p406_p10 = scmp.lt.s32.totalorder %s149_s4, %s404_s15 }
  0x1a   : > { %p401_p6 = pnand %p399_p5, %p387_p3  ;;  %p407_p12 = scmp.lt.s32.totalorder %s405_s16, %s398_s7 }
  0x1c   : > { %p402_p7 = pneg %p401_p6  ;;  %p408_p4 = por %p407_p12, %p406_p10 }
  0x1e   : > { %p409_p13 = pnand %p408_p4, %p402_p7 }
  0x20   : > { %412 = shalt.err (!%p409_p13)
}
  0x21   : > { %328 = dma.hbm_to_vmem [thread:$0]  (!%p584_p0), %s146_s30, 128, %s149_s4, %s137_s6  }
  0x22   : > { %p154_p11 = pnand %p313_p1, %p153_p2 }
  0x23   : > { %s599_s18 = sand.u32 (!%p154_p11), 1, %s477_s10  }
  0x24   : > { %157 = sbr.rel (%p154_p11) target bundleno = 187 (0xbb), region = 28  ;;  %s314_s19 = sshll.u32 (!%p154_p11), %s599_s18, 3 }
  0x25   : > { %s160_s20 = scalar_lea.sflag (!%p154_p11), [#allocation3], %s599_s18  ;;  %s163_s25 = scalar_lea.vmem (!%p154_p11), [#allocation2], %s314_s19 }
  0x29   : > { %464 = dma.done.wait (%p560_p8), %s160_s20, 128  }
  0x2a   : > { %466 = vsyncadd (%p560_p8), %s160_s20, 4294967168  ;;  %p187_p12 = scmp.lt.s32.totalorder %s485_s12, 1  ;;  %v496_v0 = vmov 0   ;;  %v190_v2 = vld [vmem:[%s163_s25] sm:$0xff]  ;;  %s318_s30 = sshll.u32 %s485_s12, 7 }
  0x2b   : > { %384 = vset.pattern.permute.xlu0 %v496_v0  ;;  %s186_s3 = scalar_lea.vmem [#allocation5], %s314_s19  ;;  %s216_s6 = scalar_lea.hbm %s654_s2, %s318_s30 }
  0x2c   : > { %s188_s26 = scalar_select %p187_p12, %s485_s12, 1 }
  0x2d   : > { %s218_s21 = sshll.u32 %s186_s3, 4  ;;  %s204_s7 = scalar_lea.sflag [#allocation4], %s599_s18  ;;  %s219_s21 = int_to_ptr.vmem [resolvable:$true] %s218_s21 }
  0x2e   : > { %s189_s29 = scalar_lea.vmem %s652_s0, %s188_s26  ;;  %s413_s8 = scalar_lea.vmem %s219_s21, 128 }
  0x2f   : > { %v316_v1 = vld [vmem:[%s189_s29] ss:$0 sm:$0xff]  ;;  %p414_p8 = scmp.ne.s32.totalorder %s219_s21, %s413_s8  ;;  %s497_s15 = smov [#allocation5]  }
  0x30   : > { %198 = vperm.xlu0 %384, %v316_v1   ;;  %s417_s16 = sshll.u32 %s497_s15, 4  ;;  %s418_s16 = int_to_ptr.vmem [resolvable:$false] %s417_s16 }
  0x31   : > { %p415_p11 = pnand %p414_p8, %p564_p9  ;;  %s419_s12 = scalar_lea.vmem %s418_s16, 256 }
  0x32   : > { %p420_p1 = scmp.lt.s32.totalorder %s219_s21, %s418_s16  ;;  %p421_p2 = scmp.lt.s32.totalorder %s419_s12, %s413_s8 }
  0x33   : > { %p416_p0 = pneg %p415_p11 }
  0x34   : > { %p422_p3 = por %p421_p2, %p420_p1 }
  0x36   : > { %p423_p5 = pnand %p422_p3, %p416_p0 }
  0xab   : > { %v199_v3 = vpop.permute.xlu0 %198 }
  0xac   : > { %v201_v4 = vmul.f32 %v199_v3, %v190_v2 }
  0xae   : > { %202 = vst [vmem:[%s186_s3] sm:$0xff] %v201_v4 }
  0xaf   : > { %426 = shalt.err (!%p423_p5)
}
  0xb0   : > { %s427_s19 = scalar_lea.hbm %s216_s6, 128  ;;  %s431_s25 = scalar_lea.hbm %s654_s2, 256 }
  0xb1   : > { %p428_p6 = scmp.ne.s32.totalorder %s216_s6, %s427_s19  ;;  %p432_p4 = scmp.lt.s32.totalorder %s216_s6, %s654_s2 }
  0xb2   : > { %p433_p13 = scmp.lt.s32.totalorder %s431_s25, %s427_s19 }
  0xb3   : > { %p429_p7 = pnand %p428_p6, %p564_p9 }
  0xb4   : > { %p434_p12 = por %p433_p13, %p432_p4 }
  0xb5   : > { %p430_p10 = pneg %p429_p7 }
  0xb7   : > { %p435_p8 = pnand %p434_p12, %p430_p10 }
  0xb9   : > { %438 = shalt.err (!%p435_p8)
}
  0xba   : > { %323 = dma.vmem_to_hbm [thread:$0]  (%p564_p9), %s219_s21, 128, %s216_s6, %s204_s7  }
  0xbb PF: > { %s230_s28 = sand.u32 1, %s473_s9   ;;  %p660_p11 = scmp.ne.s32.totalorder %s658_s24, 0 }
  0xbc   : > { %p661_p0 = scmp.ge.s32.totalorder %s493_s14, 2  ;;  %s231_s29 = scalar_lea.sflag [#allocation4], %s230_s28 }
  0xbe   : > { %p330_p1 = pnand %p661_p0, %p660_p11 }
  0xc0   : > { %p331_p2 = pneg %p330_p1 }
  0xc2   : > { %468 = dma.done.wait (%p331_p2), %s231_s29, 128  }
  0xc3   : > { %470 = vsyncadd (%p331_p2), %s231_s29, 4294967168  ;;  %s18_s14 = sadd.s32 1, %s493_s14   ;;  %s662_s9 = smov %s477_s10 }
  0xc4   : > { %p15_p3 = scmp.ge.s32.totalorder %s18_s14, 4   ;;  %s663_s10 = smov %s481_s11 }
  0xc5   : > { %s664_s11 = smov %s569_s23  ;;  %s665_s12 = smov %s489_s13 }
  0xc6   : > { %s666_s13 = smov %s668_s17  ;;  %17 = sbr.rel (!%p15_p3) target bundleno = 6 (0x6), region = 76 }
  0xcb   :  { %236 = vsyncpa [#allocation3], 1 }
  0xcc   :  { %238 = vsyncpa [#allocation3 + $0x1], 1 }
  0xcd   :  { %239 = vsyncpa [#allocation4], 1 }
  0xce   :  { %241 = vsyncpa [#allocation4 + $0x1], 1 }

</bundles_post_ra>
